<compile_context>
chip_gen: v6e
topology: v6e:2x2x1
jax: 0.10.0
libtpu: 0.0.40
codegen_flags: <defaults>
</compile_context>

<pallas_src>
import jax
import jax.numpy as jnp
from jax import lax
from jax.experimental import pallas as pl
from jax.experimental.pallas import tpu as pltpu


# ---------------------------------------------------------------------------
# Path 1: tiny / single-block linear (the LinearModule case: (3,3) @ (3,3)^T)
# ---------------------------------------------------------------------------
def _linear_single_block_kernel(x_ref, w_ref, b_ref, o_ref):
    # x_ref: (M, K), w_ref: (N, K) (torch.nn.Linear layout, NOT transposed),
    # b_ref: (1, N).  Contract over K directly -> no w.T materialization.
    acc = lax.dot_general(
        x_ref[...], w_ref[...],
        dimension_numbers=(((1,), (1,)), ((), ())),
        preferred_element_type=jnp.float32,
    )
    o_ref[...] = (acc + b_ref[...].astype(jnp.float32)).astype(o_ref.dtype)


def linear_forward_single_block(x, w, b):
    M, K = x.shape
    N, K2 = w.shape
    assert K == K2 and b.shape == (N,)
    b2 = b.reshape(1, N)  # 2D for TPU layout
    vmem = pltpu.MemorySpace.VMEM
    return pl.pallas_call(
        _linear_single_block_kernel,
        out_shape=jax.ShapeDtypeStruct((M, N), x.dtype),
        in_specs=[
            pl.BlockSpec(memory_space=vmem),
            pl.BlockSpec(memory_space=vmem),
            pl.BlockSpec(memory_space=vmem),
        ],
        out_specs=pl.BlockSpec(memory_space=vmem),
    )(x, w, b2)


# ---------------------------------------------------------------------------
# Path 2: scalable tiled linear (real M, K, N) -- f32 accumulator, bias on
# last K step, lane-dense output tiles, parallel M/N grid axes.
# ---------------------------------------------------------------------------
def _linear_tiled_kernel(x_ref, w_ref, b_ref, o_ref, acc_ref):
    k = pl.program_id(2)

    @pl.when(k == 0)
    def _():
        acc_ref[...] = jnp.zeros_like(acc_ref)

    # x_ref: (tm, tk), w_ref: (tn, tk): contract over K without transposing w.
    acc_ref[...] += lax.dot_general(
        x_ref[...], w_ref[...],
        dimension_numbers=(((1,), (1,)), ((), ())),
        preferred_element_type=jnp.float32,
    )

    @pl.when(k == pl.num_programs(2) - 1)
    def _():
        o_ref[...] = (acc_ref[...] + b_ref[...].astype(jnp.float32)).astype(o_ref.dtype)


def linear_forward_tiled(x, w, b, *, tm=128, tn=128, tk=256):
    M, K = x.shape
    N, K2 = w.shape
    assert K == K2 and b.shape == (N,)
    assert M % tm == 0 and N % tn == 0 and K % tk == 0
    b2 = b.reshape(1, N)
    grid = (M // tm, N // tn, K // tk)
    return pl.pallas_call(
        _linear_tiled_kernel,
        out_shape=jax.ShapeDtypeStruct((M, N), x.dtype),
        grid_spec=pltpu.PrefetchScalarGridSpec(
            num_scalar_prefetch=0,
            grid=grid,
            in_specs=[
                pl.BlockSpec((tm, tk), lambda i, j, k: (i, k)),
                pl.BlockSpec((tn, tk), lambda i, j, k: (j, k)),  # weight stays (N, K)
                pl.BlockSpec((1, tn), lambda i, j, k: (0, j)),
            ],
            out_specs=pl.BlockSpec((tm, tn), lambda i, j, k: (i, j)),
            scratch_shapes=[pltpu.VMEM((tm, tn), jnp.float32)],
        ),
        compiler_params=pltpu.CompilerParams(
            dimension_semantics=("parallel", "parallel", "arbitrary"),
        ),
    )(x, w, b2)


def linear_forward(x, w, b, *, tm=128, tn=128, tk=256):
    """y = x @ w.T + b  (torch.nn.Linear semantics)."""
    M, K = x.shape
    N, _ = w.shape
    if M % tm == 0 and N % tn == 0 and K % tk == 0:
        return linear_forward_tiled(x, w, b, tm=tm, tn=tn, tk=tk)
    # Tiny / ragged problems: one resident block, no grid, no pipelining.
    return linear_forward_single_block(x, w, b)


if __name__ == "__main__":
    key = jax.random.PRNGKey(0)
    kx, kw, kb, kx2, kw2, kb2 = jax.random.split(key, 6)

    # ---- LinearModule shapes: nn.Linear(3, 3) applied to torch.randn(3, 3) ----
    in_features, out_features = 3, 3
    bound = 1.0 / (in_features ** 0.5)
    x = jax.random.normal(kx, (3, 3), dtype=jnp.float32)
    w = jax.random.uniform(kw, (out_features, in_features),
                           minval=-bound, maxval=bound, dtype=jnp.float32)
    b = jax.random.uniform(kb, (out_features,),
                           minval=-bound, maxval=bound, dtype=jnp.float32)

    y = linear_forward(x, w, b)
    jax.block_until_ready(y)
    y_ref = x @ w.T + b
    assert y.shape == (3, 3)
    assert jnp.allclose(y, y_ref, atol=1e-5, rtol=1e-5)

    # ---- sanity-check the scalable tiled path at an MXU-friendly size ----
    M2, K2, N2 = 256, 512, 384
    x2 = jax.random.normal(kx2, (M2, K2), dtype=jnp.float32)
    w2 = jax.random.normal(kw2, (N2, K2), dtype=jnp.float32) * 0.05
    b2 = jax.random.normal(kb2, (N2,), dtype=jnp.float32)
    y2 = linear_forward(x2, w2, b2)
    jax.block_until_ready(y2)
    y2_ref = lax.dot_general(
        x2, w2, dimension_numbers=(((1,), (1,)), ((), ())),
        precision=lax.Precision.HIGHEST,
    ) + b2
    assert y2.shape == (M2, N2)
    assert jnp.allclose(y2, y2_ref, atol=5e-2, rtol=5e-2)

    print("KERNEL_OK")
</pallas_src>

<mosaic_0001>
module attributes {stable_mosaic.version = 11 : i64} {
  func.func @_linear_single_block_kernel(%arg0: memref<3x3xf32, #tpu.memory_space<vmem>>, %arg1: memref<3x3xf32, #tpu.memory_space<vmem>>, %arg2: memref<1x3xf32, #tpu.memory_space<vmem>>, %arg3: memref<3x3xf32, #tpu.memory_space<vmem>>) attributes {dimension_semantics = [], scalar_prefetch = 0 : i64, scratch_operands = 0 : i64, tpu.core_type = #tpu.core_type<tc>} {
    %c0 = arith.constant 0 : index
    %c0_0 = arith.constant 0 : index
    %0 = vector.load %arg0[%c0, %c0_0] : memref<3x3xf32, #tpu.memory_space<vmem>>, vector<3x3xf32>
    %c0_1 = arith.constant 0 : index
    %c0_2 = arith.constant 0 : index
    %1 = vector.load %arg1[%c0_1, %c0_2] : memref<3x3xf32, #tpu.memory_space<vmem>>, vector<3x3xf32>
    %cst = arith.constant dense<0.000000e+00> : vector<3x3xf32>
    %2 = tpu.matmul %0, %1, %cst {dimension_numbers = #tpu.dot_dimension_numbers<[1], [1], [0], [0], [0, 0, 1, 0], [], []>} : vector<3x3xf32>, vector<3x3xf32>, vector<3x3xf32> -> vector<3x3xf32>
    %c0_3 = arith.constant 0 : index
    %c0_4 = arith.constant 0 : index
    %3 = vector.load %arg2[%c0_3, %c0_4] : memref<1x3xf32, #tpu.memory_space<vmem>>, vector<1x3xf32>
    %4 = vector.broadcast %3 : vector<1x3xf32> to vector<3x3xf32>
    %5 = arith.addf %2, %4 : vector<3x3xf32>
    %c0_5 = arith.constant 0 : index
    %c0_6 = arith.constant 0 : index
    %6 = vector.load %arg3[%c0_5, %c0_6] : memref<3x3xf32, #tpu.memory_space<vmem>>, vector<3x3xf32>
    tpu.vector_store %arg3[%c0_5, %c0_6], %5 {strides = array<i32>} : memref<3x3xf32, #tpu.memory_space<vmem>>, vector<3x3xf32>,
    return
  }
}

</mosaic_0001>

<bundles_post_ra>
// kernel: tpu_custom_call.1
= control target key start
LH: loop header
LB: loop body
LE: loop exit
PB: predicated region body
PF: predicated region fallthrough
CT: control target
= control target key end

     0   :  { %8 = vsyncpa [#allocation3], 0  ;;  %s261_s0 = inlined_call_operand.hbm [shape: f32[3,3], index: 0, kind: input, shape index: {}]   ;;  %s262_s1 = inlined_call_operand.hbm [shape: f32[3,3], index: 1, kind: input, shape index: {}]   ;;  %s263_s2 = inlined_call_operand.vmem [shape: f32[1,3], index: 2, kind: input, shape index: {}]   ;;  %s264_s3 = inlined_call_operand.hbm [shape: f32[3,3], index: 3, kind: output, shape index: {}]  }
   0x1   :  { %9 = vsyncpa [#allocation6], 0 }
   0x2   :  { %10 = vsyncpa [#allocation4], 0  ;;  %s224_s12 = smov [#allocation2]   ;;  %s225_s14 = smov [#allocation5]  }
   0x3   :  { %s17_s13 = sshll.u32 %s224_s12, 4  ;;  %s27_s15 = sshll.u32 %s225_s14, 4  ;;  %s18_s13 = int_to_ptr.vmem [resolvable:$true] %s17_s13  ;;  %s28_s15 = int_to_ptr.vmem [resolvable:$true] %s27_s15 }
   0x4   :  { %s166_s16 = scalar_lea.vmem %s18_s13, 64  ;;  %p171_p1 = scmp.lt.s32.totalorder %s18_s13, %s18_s13 }
   0x5   :  { %p167_p0 = scmp.ne.s32.totalorder %s18_s13, %s166_s16  ;;  %p172_p2 = scmp.lt.s32.totalorder %s166_s16, %s166_s16 }
   0x7   :  { %p173_p3 = por %p172_p2, %p171_p1 }
   0x9   :  { %p174_p4 = pnand %p173_p3, %p167_p0 }
   0xb   :  { %177 = shalt.err (!%p174_p4)
}
   0xc   :  { %20 = dma.hbm_to_vmem [thread:$0]  %s261_s0, 64, %s18_s13, [#allocation3]  }
   0xd   :  { %s186_s19 = scalar_lea.vmem %s28_s15, 64  ;;  %p191_p6 = scmp.lt.s32.totalorder %s28_s15, %s28_s15 }
   0xe   :  { %p187_p5 = scmp.ne.s32.totalorder %s28_s15, %s186_s19  ;;  %p192_p7 = scmp.lt.s32.totalorder %s186_s19, %s186_s19 }
  0x10   :  { %p193_p8 = por %p192_p7, %p191_p6 }
  0x12   :  { %p194_p9 = pnand %p193_p8, %p187_p5 }
  0x14   :  { %197 = shalt.err (!%p194_p9)
}
  0x15   :  { %30 = dma.hbm_to_vmem [thread:$0]  %s262_s1, 64, %s28_s15, [#allocation6]  }
  0x16   :  { %218 = dma.done.wait [#allocation3], 64  }
  0x17   :  { %219 = vsyncadd [#allocation3], 4294967232 }
  0x18   :  { %220 = dma.done.wait [#allocation6], 64  }
  0x19   :  { %221 = vsyncadd [#allocation6], 4294967232  ;;  %v226_v0 = vmov 0.0   ;;  %vm227_vm0 = vmmov 0   ;;  %vm48_vm1 = vcmask 23552   ;;  %s228_s23 = smov [#allocation7]  }
  0x1a   :  { %148 = vmatprep.subr.mxu0 %v226_v0  ;;  %150 = vmatprep.mubr.msk.f32.mxu0 %vm227_vm0, %v226_v0  ;;  %v40_v1 = vld [vmem:[#allocation5] sm:$0x7]  ;;  %v39_v2 = vld [vmem:[#allocation2] sm:$0x7]  ;;  %s133_s24 = sshll.u32 %s228_s23, 4  ;;  %vm125_vm2 = vcmask 18432   ;;  %s134_s24 = int_to_ptr.vmem [resolvable:$true] %s133_s24 }
  0x1b   :  { %149 = vmatpush3.xpose.msk.msra.mxu0 %vm48_vm1, %v40_v1  ;;  %v143_v3 = vld [vmem:[%s263_s2] ss:$0 sm:$0xff]  ;;  %s198_s1 = scalar_lea.vmem %s134_s24, 64  ;;  %p203_p11 = scmp.lt.s32.totalorder %s134_s24, %s134_s24 }
  0x1c   :  { %p199_p10 = scmp.ne.s32.totalorder %s134_s24, %s198_s1  ;;  %p204_p12 = scmp.lt.s32.totalorder %s198_s1, %s198_s1 }
  0x1e   :  { %151 = vmatmul.mubr.msk.f32.vlgmr.msra.gmra.mxu0 %vm48_vm1, %v39_v2  ;;  %p205_p13 = por %p204_p12, %p203_p11 }
  0x20   :  { %p206_p0 = pnand %p205_p13, %p199_p10 }
  0xde   :  { %v121_v4 = vpop.f32.mrf.mxu0 }
  0xdf   :  { %v122_v5 = vadd.f32 %v143_v3, %v121_v4 }
  0xe0   :  { %v152_v6 = vpop.f32.mrf.mxu0 }
  0xe1   :  { %126 = vst.msk [vmem:[#allocation7] sm:$0x7] %vm125_vm2, %v122_v5 }
  0xe2   :  { %209 = shalt.err (!%p206_p0)
}
  0xe3   :  { %136 = dma.vmem_to_hbm [thread:$0]  %s134_s24, 64, %s264_s3, [#allocation4]  }
  0xe4   :  { %222 = dma.done.wait [#allocation4], 64  }
  0xe5   :  { %223 = vsyncadd [#allocation4], 4294967232 }
  0xe6   :  { %140 = vsyncpa [#allocation3], 1 }
  0xe7   :  { %141 = vsyncpa [#allocation6], 1 }
  0xe8   :  { %142 = vsyncpa [#allocation4], 1 }

</bundles_post_ra>
